<compile_context>
chip_gen: v7x
topology: tpu7x:2x2x1
jax: 0.10.0
libtpu: 0.0.40
codegen_flags: <defaults>
</compile_context>

<pallas_src>
import jax
import jax.numpy as jnp
from jax.experimental import pallas as pl
from jax.experimental.pallas import tpu as pltpu

EMB_SIZE = 100          # vocab size (emb_size)
H1 = 40                 # hidden_size1 (embedding dim)
SEQ = 10                # tokens per example; SEQ * H1 == hidden_size2
H2 = SEQ * H1           # hidden_size2 = 400
NCLS = 3                # output classes of fc1
BATCH = 2

NPAD = 128              # class dim padded to one lane tile (lane-dense output)
SUBL = 8                # sublane stride per token slot in the gather scratch
NEG_BIG = -1e30         # finite "minus infinity" for padded class lanes


def make_embnet_kernel(B, S, h1, npad):
    """Single-step kernel: on-chip gather + S accumulated MXU dots + log_softmax."""

    def kernel(ids_ref, emb_ref, w_ref, b_ref, o_ref, gbuf):
        # --- Gather: embedding row of token (b, s) -> 8-sublane-aligned slot
        #     of the scratch.  Dynamic-sublane read from the resident table,
        #     static aligned full-lane write into the scratch.
        for s in range(S):
            for b in range(B):
                idx = ids_ref[b * S + s]
                gbuf[pl.ds(s * SUBL + b, 1), :] = emb_ref[pl.ds(idx, 1), :]

        # --- acc[b, c] = sum_s emb[ids[b, s], :] @ W[s, :, c]
        #     S tiny (B, h1) @ (h1, npad) MXU dots accumulated in registers.
        acc = jnp.zeros((B, npad), jnp.float32)
        for s in range(S):
            g_s = gbuf[pl.ds(s * SUBL, B), :]                  # (B, h1)
            acc = acc + jnp.dot(g_s, w_ref[s],
                                preferred_element_type=jnp.float32)

        logits = acc + b_ref[...]          # padded class lanes carry ~ -1e30

        # --- Numerically stable log_softmax; padded lanes underflow to 0.
        m = jnp.max(logits, axis=-1, keepdims=True)
        z = logits - m
        lse = jnp.log(jnp.sum(jnp.exp(z), axis=-1, keepdims=True))
        o_ref[...] = (z - lse).astype(o_ref.dtype)             # (B, 128) store

    return kernel


def prepare_params(emb_table, w_t, bias):
    """One-time parameter prep -- hoisted out of the per-call forward path."""
    emb_f32 = emb_table.astype(jnp.float32)                       # (V, H1)
    w3 = w_t.reshape(SEQ, H1, NCLS).astype(jnp.float32)
    w_pad = (jnp.zeros((SEQ, H1, NPAD), jnp.float32)
             .at[:, :, :NCLS].set(w3))                            # (S, H1, 128)
    b_pad = (jnp.full((1, NPAD), NEG_BIG, jnp.float32)
             .at[0, :NCLS].set(bias.astype(jnp.float32)))         # (1, 128)
    return emb_f32, w_pad, b_pad


@jax.jit
def embnet_forward(x, emb_f32, w_pad, b_pad):
    """x: (B, S) int ids; emb_f32/w_pad/b_pad from prepare_params (padded once)."""
    B, S = x.shape
    V, h1 = emb_f32.shape

    ids = x.reshape(-1).astype(jnp.int32)             # (B*S,) -> scalar prefetch

    grid_spec = pltpu.PrefetchScalarGridSpec(
        num_scalar_prefetch=1,
        grid=(1,),                                     # single invocation
        in_specs=[
            pl.BlockSpec((V, h1), lambda i, ids: (0, 0)),            # full table
            pl.BlockSpec((S, h1, NPAD), lambda i, ids: (0, 0, 0)),   # full weight
            pl.BlockSpec((1, NPAD), lambda i, ids: (0, 0)),          # bias
        ],
        out_specs=pl.BlockSpec((B, NPAD), lambda i, ids: (0, 0)),
        scratch_shapes=[pltpu.VMEM((S * SUBL, h1), jnp.float32)],    # gather buf
    )

    out_pad = pl.pallas_call(
        make_embnet_kernel(B, S, h1, NPAD),
        out_shape=jax.ShapeDtypeStruct((B, NPAD), jnp.float32),
        grid_spec=grid_spec,
        compiler_params=pltpu.CompilerParams(
            dimension_semantics=("arbitrary",)),
        cost_estimate=pl.CostEstimate(
            flops=2 * B * S * h1 * NPAD,
            transcendentals=B * NPAD,
            bytes_accessed=(B * S * 4 + V * h1 * 4 + S * h1 * NPAD * 4
                            + NPAD * 4 + B * NPAD * 4)),
    )(ids, emb_f32, w_pad, b_pad)

    return out_pad[:, :NCLS]                          # (B, 3) log-probs


def embnet_ref(x, emb_table, w_t, bias):
    """Pure-JAX reference matching the PyTorch forward exactly."""
    embeds = emb_table[x].reshape(x.shape[0], -1)     # (B, S*H1)
    out = embeds @ w_t + bias                         # (B, 3)
    return jax.nn.log_softmax(out, axis=-1)


if __name__ == "__main__":
    key = jax.random.PRNGKey(0)
    k_emb, k_w, k_b, k_x = jax.random.split(key, 4)

    # Deterministic parameter init (shapes from EmbNet.__init__):
    #   nn.Embedding(emb_size, hidden_size1) -> N(0, 1)
    #   nn.Linear(hidden_size2=400, 3)       -> U(-1/sqrt(400), 1/sqrt(400))
    emb_table = jax.random.normal(k_emb, (EMB_SIZE, H1), dtype=jnp.float32)
    bound = 1.0 / jnp.sqrt(jnp.float32(H2))
    w_t = jax.random.uniform(k_w, (H2, NCLS), minval=-bound, maxval=bound,
                             dtype=jnp.float32)
    bias = jax.random.uniform(k_b, (NCLS,), minval=-bound, maxval=bound,
                              dtype=jnp.float32)

    # Input token ids (B, S).
    x = jax.random.randint(k_x, (BATCH, SEQ), 0, EMB_SIZE, dtype=jnp.int32)

    # Pad / reshape parameters ONCE (hoisted out of the forward path).
    emb_f32, w_pad, b_pad = prepare_params(emb_table, w_t, bias)
    emb_f32, w_pad, b_pad = jax.block_until_ready((emb_f32, w_pad, b_pad))

    out = embnet_forward(x, emb_f32, w_pad, b_pad)
    out = jax.block_until_ready(out)

    ref = embnet_ref(x, emb_table, w_t, bias)
    assert out.shape == (BATCH, NCLS)
    assert jnp.allclose(out, ref, atol=1e-4, rtol=1e-4), (out, ref)

    print("KERNEL_OK")
</pallas_src>

<mosaic_0001>
module attributes {stable_mosaic.version = 11 : i64} {
  func.func @kernel(%arg0: i32, %arg1: memref<20xi32, #tpu.memory_space<smem>>, %arg2: memref<100x40xf32, #tpu.memory_space<vmem>>, %arg3: memref<10x40x128xf32, #tpu.memory_space<vmem>>, %arg4: memref<1x128xf32, #tpu.memory_space<vmem>>, %arg5: memref<2x128xf32, #tpu.memory_space<vmem>>, %arg6: memref<80x40xf32, #tpu.memory_space<vmem>>) attributes {dimension_semantics = [#tpu.dimension_semantics<arbitrary>], iteration_bounds = array<i64: 1>, scalar_prefetch = 1 : i64, scratch_operands = 1 : i64, tpu.core_type = #tpu.core_type<tc>, window_params = [{pipeline_mode = #tpu.pipeline_mode<synchronous>, transform_indices = @transform_0, window_bounds = array<i64: 100, 40>}, {pipeline_mode = #tpu.pipeline_mode<synchronous>, transform_indices = @transform_1, window_bounds = array<i64: 10, 40, 128>}, {pipeline_mode = #tpu.pipeline_mode<synchronous>, transform_indices = @transform_2, window_bounds = array<i64: 1, 128>}, {pipeline_mode = #tpu.pipeline_mode<synchronous>, transform_indices = @transform_3, window_bounds = array<i64: 2, 128>}]} {
    %c0 = arith.constant 0 : index
    %0 = memref.load %arg1[%c0] : memref<20xi32, #tpu.memory_space<smem>>
    %1 = arith.index_cast %0 : i32 to index
    %c0_0 = arith.constant 0 : index
    %2 = vector.load %arg2[%1, %c0_0] : memref<100x40xf32, #tpu.memory_space<vmem>>, vector<1x40xf32>
    %c0_1 = arith.constant 0 : index
    %c0_2 = arith.constant 0 : index
    %3 = vector.load %arg6[%c0_1, %c0_2] : memref<80x40xf32, #tpu.memory_space<vmem>>, vector<1x40xf32>
    tpu.vector_store %arg6[%c0_1, %c0_2], %2 {strides = array<i32>} : memref<80x40xf32, #tpu.memory_space<vmem>>, vector<1x40xf32>,
    %c10 = arith.constant 10 : index
    %4 = memref.load %arg1[%c10] : memref<20xi32, #tpu.memory_space<smem>>
    %5 = arith.index_cast %4 : i32 to index
    %c0_3 = arith.constant 0 : index
    %6 = vector.load %arg2[%5, %c0_3] : memref<100x40xf32, #tpu.memory_space<vmem>>, vector<1x40xf32>
    %c1 = arith.constant 1 : index
    %c0_4 = arith.constant 0 : index
    %7 = vector.load %arg6[%c1, %c0_4] : memref<80x40xf32, #tpu.memory_space<vmem>>, vector<1x40xf32>
    tpu.vector_store %arg6[%c1, %c0_4], %6 {strides = array<i32>} : memref<80x40xf32, #tpu.memory_space<vmem>>, vector<1x40xf32>,
    %c1_5 = arith.constant 1 : index
    %8 = memref.load %arg1[%c1_5] : memref<20xi32, #tpu.memory_space<smem>>
    %9 = arith.index_cast %8 : i32 to index
    %c0_6 = arith.constant 0 : index
    %10 = vector.load %arg2[%9, %c0_6] : memref<100x40xf32, #tpu.memory_space<vmem>>, vector<1x40xf32>
    %c8 = arith.constant 8 : index
    %c0_7 = arith.constant 0 : index
    %11 = vector.load %arg6[%c8, %c0_7] : memref<80x40xf32, #tpu.memory_space<vmem>>, vector<1x40xf32>
    tpu.vector_store %arg6[%c8, %c0_7], %10 {strides = array<i32>} : memref<80x40xf32, #tpu.memory_space<vmem>>, vector<1x40xf32>,
    %c11 = arith.constant 11 : index
    %12 = memref.load %arg1[%c11] : memref<20xi32, #tpu.memory_space<smem>>
    %13 = arith.index_cast %12 : i32 to index
    %c0_8 = arith.constant 0 : index
    %14 = vector.load %arg2[%13, %c0_8] : memref<100x40xf32, #tpu.memory_space<vmem>>, vector<1x40xf32>
    %c9 = arith.constant 9 : index
    %c0_9 = arith.constant 0 : index
    %15 = vector.load %arg6[%c9, %c0_9] : memref<80x40xf32, #tpu.memory_space<vmem>>, vector<1x40xf32>
    tpu.vector_store %arg6[%c9, %c0_9], %14 {strides = array<i32>} : memref<80x40xf32, #tpu.memory_space<vmem>>, vector<1x40xf32>,
    %c2 = arith.constant 2 : index
    %16 = memref.load %arg1[%c2] : memref<20xi32, #tpu.memory_space<smem>>
    %17 = arith.index_cast %16 : i32 to index
    %c0_10 = arith.constant 0 : index
    %18 = vector.load %arg2[%17, %c0_10] : memref<100x40xf32, #tpu.memory_space<vmem>>, vector<1x40xf32>
    %c16 = arith.constant 16 : index
    %c0_11 = arith.constant 0 : index
    %19 = vector.load %arg6[%c16, %c0_11] : memref<80x40xf32, #tpu.memory_space<vmem>>, vector<1x40xf32>
    tpu.vector_store %arg6[%c16, %c0_11], %18 {strides = array<i32>} : memref<80x40xf32, #tpu.memory_space<vmem>>, vector<1x40xf32>,
    %c12 = arith.constant 12 : index
    %20 = memref.load %arg1[%c12] : memref<20xi32, #tpu.memory_space<smem>>
    %21 = arith.index_cast %20 : i32 to index
    %c0_12 = arith.constant 0 : index
    %22 = vector.load %arg2[%21, %c0_12] : memref<100x40xf32, #tpu.memory_space<vmem>>, vector<1x40xf32>
    %c17 = arith.constant 17 : index
    %c0_13 = arith.constant 0 : index
    %23 = vector.load %arg6[%c17, %c0_13] : memref<80x40xf32, #tpu.memory_space<vmem>>, vector<1x40xf32>
    tpu.vector_store %arg6[%c17, %c0_13], %22 {strides = array<i32>} : memref<80x40xf32, #tpu.memory_space<vmem>>, vector<1x40xf32>,
    %c3 = arith.constant 3 : index
    %24 = memref.load %arg1[%c3] : memref<20xi32, #tpu.memory_space<smem>>
    %25 = arith.index_cast %24 : i32 to index
    %c0_14 = arith.constant 0 : index
    %26 = vector.load %arg2[%25, %c0_14] : memref<100x40xf32, #tpu.memory_space<vmem>>, vector<1x40xf32>
    %c24 = arith.constant 24 : index
    %c0_15 = arith.constant 0 : index
    %27 = vector.load %arg6[%c24, %c0_15] : memref<80x40xf32, #tpu.memory_space<vmem>>, vector<1x40xf32>
    tpu.vector_store %arg6[%c24, %c0_15], %26 {strides = array<i32>} : memref<80x40xf32, #tpu.memory_space<vmem>>, vector<1x40xf32>,
    %c13 = arith.constant 13 : index
    %28 = memref.load %arg1[%c13] : memref<20xi32, #tpu.memory_space<smem>>
    %29 = arith.index_cast %28 : i32 to index
    %c0_16 = arith.constant 0 : index
    %30 = vector.load %arg2[%29, %c0_16] : memref<100x40xf32, #tpu.memory_space<vmem>>, vector<1x40xf32>
    %c25 = arith.constant 25 : index
    %c0_17 = arith.constant 0 : index
    %31 = vector.load %arg6[%c25, %c0_17] : memref<80x40xf32, #tpu.memory_space<vmem>>, vector<1x40xf32>
    tpu.vector_store %arg6[%c25, %c0_17], %30 {strides = array<i32>} : memref<80x40xf32, #tpu.memory_space<vmem>>, vector<1x40xf32>,
    %c4 = arith.constant 4 : index
    %32 = memref.load %arg1[%c4] : memref<20xi32, #tpu.memory_space<smem>>
    %33 = arith.index_cast %32 : i32 to index
    %c0_18 = arith.constant 0 : index
    %34 = vector.load %arg2[%33, %c0_18] : memref<100x40xf32, #tpu.memory_space<vmem>>, vector<1x40xf32>
    %c32 = arith.constant 32 : index
    %c0_19 = arith.constant 0 : index
    %35 = vector.load %arg6[%c32, %c0_19] : memref<80x40xf32, #tpu.memory_space<vmem>>, vector<1x40xf32>
    tpu.vector_store %arg6[%c32, %c0_19], %34 {strides = array<i32>} : memref<80x40xf32, #tpu.memory_space<vmem>>, vector<1x40xf32>,
    %c14 = arith.constant 14 : index
    %36 = memref.load %arg1[%c14] : memref<20xi32, #tpu.memory_space<smem>>
    %37 = arith.index_cast %36 : i32 to index
    %c0_20 = arith.constant 0 : index
    %38 = vector.load %arg2[%37, %c0_20] : memref<100x40xf32, #tpu.memory_space<vmem>>, vector<1x40xf32>
    %c33 = arith.constant 33 : index
    %c0_21 = arith.constant 0 : index
    %39 = vector.load %arg6[%c33, %c0_21] : memref<80x40xf32, #tpu.memory_space<vmem>>, vector<1x40xf32>
    tpu.vector_store %arg6[%c33, %c0_21], %38 {strides = array<i32>} : memref<80x40xf32, #tpu.memory_space<vmem>>, vector<1x40xf32>,
    %c5 = arith.constant 5 : index
    %40 = memref.load %arg1[%c5] : memref<20xi32, #tpu.memory_space<smem>>
    %41 = arith.index_cast %40 : i32 to index
    %c0_22 = arith.constant 0 : index
    %42 = vector.load %arg2[%41, %c0_22] : memref<100x40xf32, #tpu.memory_space<vmem>>, vector<1x40xf32>
    %c40 = arith.constant 40 : index
    %c0_23 = arith.constant 0 : index
    %43 = vector.load %arg6[%c40, %c0_23] : memref<80x40xf32, #tpu.memory_space<vmem>>, vector<1x40xf32>
    tpu.vector_store %arg6[%c40, %c0_23], %42 {strides = array<i32>} : memref<80x40xf32, #tpu.memory_space<vmem>>, vector<1x40xf32>,
    %c15 = arith.constant 15 : index
    %44 = memref.load %arg1[%c15] : memref<20xi32, #tpu.memory_space<smem>>
    %45 = arith.index_cast %44 : i32 to index
    %c0_24 = arith.constant 0 : index
    %46 = vector.load %arg2[%45, %c0_24] : memref<100x40xf32, #tpu.memory_space<vmem>>, vector<1x40xf32>
    %c41 = arith.constant 41 : index
    %c0_25 = arith.constant 0 : index
    %47 = vector.load %arg6[%c41, %c0_25] : memref<80x40xf32, #tpu.memory_space<vmem>>, vector<1x40xf32>
    tpu.vector_store %arg6[%c41, %c0_25], %46 {strides = array<i32>} : memref<80x40xf32, #tpu.memory_space<vmem>>, vector<1x40xf32>,
    %c6 = arith.constant 6 : index
    %48 = memref.load %arg1[%c6] : memref<20xi32, #tpu.memory_space<smem>>
    %49 = arith.index_cast %48 : i32 to index
    %c0_26 = arith.constant 0 : index
    %50 = vector.load %arg2[%49, %c0_26] : memref<100x40xf32, #tpu.memory_space<vmem>>, vector<1x40xf32>
    %c48 = arith.constant 48 : index
    %c0_27 = arith.constant 0 : index
    %51 = vector.load %arg6[%c48, %c0_27] : memref<80x40xf32, #tpu.memory_space<vmem>>, vector<1x40xf32>
    tpu.vector_store %arg6[%c48, %c0_27], %50 {strides = array<i32>} : memref<80x40xf32, #tpu.memory_space<vmem>>, vector<1x40xf32>,
    %c16_28 = arith.constant 16 : index
    %52 = memref.load %arg1[%c16_28] : memref<20xi32, #tpu.memory_space<smem>>
    %53 = arith.index_cast %52 : i32 to index
    %c0_29 = arith.constant 0 : index
    %54 = vector.load %arg2[%53, %c0_29] : memref<100x40xf32, #tpu.memory_space<vmem>>, vector<1x40xf32>
    %c49 = arith.constant 49 : index
    %c0_30 = arith.constant 0 : index
    %55 = vector.load %arg6[%c49, %c0_30] : memref<80x40xf32, #tpu.memory_space<vmem>>, vector<1x40xf32>
    tpu.vector_store %arg6[%c49, %c0_30], %54 {strides = array<i32>} : memref<80x40xf32, #tpu.memory_space<vmem>>, vector<1x40xf32>,
    %c7 = arith.constant 7 : index
    %56 = memref.load %arg1[%c7] : memref<20xi32, #tpu.memory_space<smem>>
    %57 = arith.index_cast %56 : i32 to index
    %c0_31 = arith.constant 0 : index
    %58 = vector.load %arg2[%57, %c0_31] : memref<100x40xf32, #tpu.memory_space<vmem>>, vector<1x40xf32>
    %c56 = arith.constant 56 : index
    %c0_32 = arith.constant 0 : index
    %59 = vector.load %arg6[%c56, %c0_32] : memref<80x40xf32, #tpu.memory_space<vmem>>, vector<1x40xf32>
    tpu.vector_store %arg6[%c56, %c0_32], %58 {strides = array<i32>} : memref<80x40xf32, #tpu.memory_space<vmem>>, vector<1x40xf32>,
    %c17_33 = arith.constant 17 : index
    %60 = memref.load %arg1[%c17_33] : memref<20xi32, #tpu.memory_space<smem>>
    %61 = arith.index_cast %60 : i32 to index
    %c0_34 = arith.constant 0 : index
    %62 = vector.load %arg2[%61, %c0_34] : memref<100x40xf32, #tpu.memory_space<vmem>>, vector<1x40xf32>
    %c57 = arith.constant 57 : index
    %c0_35 = arith.constant 0 : index
    %63 = vector.load %arg6[%c57, %c0_35] : memref<80x40xf32, #tpu.memory_space<vmem>>, vector<1x40xf32>
    tpu.vector_store %arg6[%c57, %c0_35], %62 {strides = array<i32>} : memref<80x40xf32, #tpu.memory_space<vmem>>, vector<1x40xf32>,
    %c8_36 = arith.constant 8 : index
    %64 = memref.load %arg1[%c8_36] : memref<20xi32, #tpu.memory_space<smem>>
    %65 = arith.index_cast %64 : i32 to index
    %c0_37 = arith.constant 0 : index
    %66 = vector.load %arg2[%65, %c0_37] : memref<100x40xf32, #tpu.memory_space<vmem>>, vector<1x40xf32>
    %c64 = arith.constant 64 : index
    %c0_38 = arith.constant 0 : index
    %67 = vector.load %arg6[%c64, %c0_38] : memref<80x40xf32, #tpu.memory_space<vmem>>, vector<1x40xf32>
    tpu.vector_store %arg6[%c64, %c0_38], %66 {strides = array<i32>} : memref<80x40xf32, #tpu.memory_space<vmem>>, vector<1x40xf32>,
    %c18 = arith.constant 18 : index
    %68 = memref.load %arg1[%c18] : memref<20xi32, #tpu.memory_space<smem>>
    %69 = arith.index_cast %68 : i32 to index
    %c0_39 = arith.constant 0 : index
    %70 = vector.load %arg2[%69, %c0_39] : memref<100x40xf32, #tpu.memory_space<vmem>>, vector<1x40xf32>
    %c65 = arith.constant 65 : index
    %c0_40 = arith.constant 0 : index
    %71 = vector.load %arg6[%c65, %c0_40] : memref<80x40xf32, #tpu.memory_space<vmem>>, vector<1x40xf32>
    tpu.vector_store %arg6[%c65, %c0_40], %70 {strides = array<i32>} : memref<80x40xf32, #tpu.memory_space<vmem>>, vector<1x40xf32>,
    %c9_41 = arith.constant 9 : index
    %72 = memref.load %arg1[%c9_41] : memref<20xi32, #tpu.memory_space<smem>>
    %73 = arith.index_cast %72 : i32 to index
    %c0_42 = arith.constant 0 : index
    %74 = vector.load %arg2[%73, %c0_42] : memref<100x40xf32, #tpu.memory_space<vmem>>, vector<1x40xf32>
    %c72 = arith.constant 72 : index
    %c0_43 = arith.constant 0 : index
    %75 = vector.load %arg6[%c72, %c0_43] : memref<80x40xf32, #tpu.memory_space<vmem>>, vector<1x40xf32>
    tpu.vector_store %arg6[%c72, %c0_43], %74 {strides = array<i32>} : memref<80x40xf32, #tpu.memory_space<vmem>>, vector<1x40xf32>,
    %c19 = arith.constant 19 : index
    %76 = memref.load %arg1[%c19] : memref<20xi32, #tpu.memory_space<smem>>
    %77 = arith.index_cast %76 : i32 to index
    %c0_44 = arith.constant 0 : index
    %78 = vector.load %arg2[%77, %c0_44] : memref<100x40xf32, #tpu.memory_space<vmem>>, vector<1x40xf32>
    %c73 = arith.constant 73 : index
    %c0_45 = arith.constant 0 : index
    %79 = vector.load %arg6[%c73, %c0_45] : memref<80x40xf32, #tpu.memory_space<vmem>>, vector<1x40xf32>
    tpu.vector_store %arg6[%c73, %c0_45], %78 {strides = array<i32>} : memref<80x40xf32, #tpu.memory_space<vmem>>, vector<1x40xf32>,
    %cst = arith.constant 0.000000e+00 : f32
    %80 = vector.broadcast %cst : f32 to vector<2x128xf32>
    %c0_46 = arith.constant 0 : index
    %c0_47 = arith.constant 0 : index
    %81 = vector.load %arg6[%c0_46, %c0_47] : memref<80x40xf32, #tpu.memory_space<vmem>>, vector<2x40xf32>
    %c0_48 = arith.constant 0 : index
    %c0_49 = arith.constant 0 : index
    %c0_50 = arith.constant 0 : index
    %82 = vector.load %arg3[%c0_48, %c0_49, %c0_50] : memref<10x40x128xf32, #tpu.memory_space<vmem>>, vector<1x40x128xf32>
    %83 = vector.shape_cast %82 : vector<1x40x128xf32> to vector<40x128xf32>
    %cst_51 = arith.constant dense<0.000000e+00> : vector<2x128xf32>
    %84 = tpu.matmul %81, %83, %cst_51 {dimension_numbers = #tpu.dot_dimension_numbers<[1], [0], [0], [1], [0, 0, 1, 1], [], []>} : vector<2x40xf32>, vector<40x128xf32>, vector<2x128xf32> -> vector<2x128xf32>
    %85 = arith.addf %80, %84 : vector<2x128xf32>
    %c8_52 = arith.constant 8 : index
    %c0_53 = arith.constant 0 : index
    %86 = vector.load %arg6[%c8_52, %c0_53] : memref<80x40xf32, #tpu.memory_space<vmem>>, vector<2x40xf32>
    %c1_54 = arith.constant 1 : index
    %c0_55 = arith.constant 0 : index
    %c0_56 = arith.constant 0 : index
    %87 = vector.load %arg3[%c1_54, %c0_55, %c0_56] : memref<10x40x128xf32, #tpu.memory_space<vmem>>, vector<1x40x128xf32>
    %88 = vector.shape_cast %87 : vector<1x40x128xf32> to vector<40x128xf32>
    %cst_57 = arith.constant dense<0.000000e+00> : vector<2x128xf32>
    %89 = tpu.matmul %86, %88, %cst_57 {dimension_numbers = #tpu.dot_dimension_numbers<[1], [0], [0], [1], [0, 0, 1, 1], [], []>} : vector<2x40xf32>, vector<40x128xf32>, vector<2x128xf32> -> vector<2x128xf32>
    %90 = arith.addf %85, %89 : vector<2x128xf32>
    %c16_58 = arith.constant 16 : index
    %c0_59 = arith.constant 0 : index
    %91 = vector.load %arg6[%c16_58, %c0_59] : memref<80x40xf32, #tpu.memory_space<vmem>>, vector<2x40xf32>
    %c2_60 = arith.constant 2 : index
    %c0_61 = arith.constant 0 : index
    %c0_62 = arith.constant 0 : index
    %92 = vector.load %arg3[%c2_60, %c0_61, %c0_62] : memref<10x40x128xf32, #tpu.memory_space<vmem>>, vector<1x40x128xf32>
    %93 = vector.shape_cast %92 : vector<1x40x128xf32> to vector<40x128xf32>
    %cst_63 = arith.constant dense<0.000000e+00> : vector<2x128xf32>
    %94 = tpu.matmul %91, %93, %cst_63 {dimension_numbers = #tpu.dot_dimension_numbers<[1], [0], [0], [1], [0, 0, 1, 1], [], []>} : vector<2x40xf32>, vector<40x128xf32>, vector<2x128xf32> -> vector<2x128xf32>
    %95 = arith.addf %90, %94 : vector<2x128xf32>
    %c24_64 = arith.constant 24 : index
    %c0_65 = arith.constant 0 : index
    %96 = vector.load %arg6[%c24_64, %c0_65] : memref<80x40xf32, #tpu.memory_space<vmem>>, vector<2x40xf32>
    %c3_66 = arith.constant 3 : index
    %c0_67 = arith.constant 0 : index
    %c0_68 = arith.constant 0 : index
    %97 = vector.load %arg3[%c3_66, %c0_67, %c0_68] : memref<10x40x128xf32, #tpu.memory_space<vmem>>, vector<1x40x128xf32>
    %98 = vector.shape_cast %97 : vector<1x40x128xf32> to vector<40x128xf32>
    %cst_69 = arith.constant dense<0.000000e+00> : vector<2x128xf32>
    %99 = tpu.matmul %96, %98, %cst_69 {dimension_numbers = #tpu.dot_dimension_numbers<[1], [0], [0], [1], [0, 0, 1, 1], [], []>} : vector<2x40xf32>, vector<40x128xf32>, vector<2x128xf32> -> vector<2x128xf32>
    %100 = arith.addf %95, %99 : vector<2x128xf32>
    %c32_70 = arith.constant 32 : index
    %c0_71 = arith.constant 0 : index
    %101 = vector.load %arg6[%c32_70, %c0_71] : memref<80x40xf32, #tpu.memory_space<vmem>>, vector<2x40xf32>
    %c4_72 = arith.constant 4 : index
    %c0_73 = arith.constant 0 : index
    %c0_74 = arith.constant 0 : index
    %102 = vector.load %arg3[%c4_72, %c0_73, %c0_74] : memref<10x40x128xf32, #tpu.memory_space<vmem>>, vector<1x40x128xf32>
    %103 = vector.shape_cast %102 : vector<1x40x128xf32> to vector<40x128xf32>
    %cst_75 = arith.constant dense<0.000000e+00> : vector<2x128xf32>
    %104 = tpu.matmul %101, %103, %cst_75 {dimension_numbers = #tpu.dot_dimension_numbers<[1], [0], [0], [1], [0, 0, 1, 1], [], []>} : vector<2x40xf32>, vector<40x128xf32>, vector<2x128xf32> -> vector<2x128xf32>
    %105 = arith.addf %100, %104 : vector<2x128xf32>
    %c40_76 = arith.constant 40 : index
    %c0_77 = arith.constant 0 : index
    %106 = vector.load %arg6[%c40_76, %c0_77] : memref<80x40xf32, #tpu.memory_space<vmem>>, vector<2x40xf32>
    %c5_78 = arith.constant 5 : index
    %c0_79 = arith.constant 0 : index
    %c0_80 = arith.constant 0 : index
    %107 = vector.load %arg3[%c5_78, %c0_79, %c0_80] : memref<10x40x128xf32, #tpu.memory_space<vmem>>, vector<1x40x128xf32>
    %108 = vector.shape_cast %107 : vector<1x40x128xf32> to vector<40x128xf32>
    %cst_81 = arith.constant dense<0.000000e+00> : vector<2x128xf32>
    %109 = tpu.matmul %106, %108, %cst_81 {dimension_numbers = #tpu.dot_dimension_numbers<[1], [0], [0], [1], [0, 0, 1, 1], [], []>} : vector<2x40xf32>, vector<40x128xf32>, vector<2x128xf32> -> vector<2x128xf32>
    %110 = arith.addf %105, %109 : vector<2x128xf32>
    %c48_82 = arith.constant 48 : index
    %c0_83 = arith.constant 0 : index
    %111 = vector.load %arg6[%c48_82, %c0_83] : memref<80x40xf32, #tpu.memory_space<vmem>>, vector<2x40xf32>
    %c6_84 = arith.constant 6 : index
    %c0_85 = arith.constant 0 : index
    %c0_86 = arith.constant 0 : index
    %112 = vector.load %arg3[%c6_84, %c0_85, %c0_86] : memref<10x40x128xf32, #tpu.memory_space<vmem>>, vector<1x40x128xf32>
    %113 = vector.shape_cast %112 : vector<1x40x128xf32> to vector<40x128xf32>
    %cst_87 = arith.constant dense<0.000000e+00> : vector<2x128xf32>
    %114 = tpu.matmul %111, %113, %cst_87 {dimension_numbers = #tpu.dot_dimension_numbers<[1], [0], [0], [1], [0, 0, 1, 1], [], []>} : vector<2x40xf32>, vector<40x128xf32>, vector<2x128xf32> -> vector<2x128xf32>
    %115 = arith.addf %110, %114 : vector<2x128xf32>
    %c56_88 = arith.constant 56 : index
    %c0_89 = arith.constant 0 : index
    %116 = vector.load %arg6[%c56_88, %c0_89] : memref<80x40xf32, #tpu.memory_space<vmem>>, vector<2x40xf32>
    %c7_90 = arith.constant 7 : index
    %c0_91 = arith.constant 0 : index
    %c0_92 = arith.constant 0 : index
    %117 = vector.load %arg3[%c7_90, %c0_91, %c0_92] : memref<10x40x128xf32, #tpu.memory_space<vmem>>, vector<1x40x128xf32>
    %118 = vector.shape_cast %117 : vector<1x40x128xf32> to vector<40x128xf32>
    %cst_93 = arith.constant dense<0.000000e+00> : vector<2x128xf32>
    %119 = tpu.matmul %116, %118, %cst_93 {dimension_numbers = #tpu.dot_dimension_numbers<[1], [0], [0], [1], [0, 0, 1, 1], [], []>} : vector<2x40xf32>, vector<40x128xf32>, vector<2x128xf32> -> vector<2x128xf32>
    %120 = arith.addf %115, %119 : vector<2x128xf32>
    %c64_94 = arith.constant 64 : index
    %c0_95 = arith.constant 0 : index
    %121 = vector.load %arg6[%c64_94, %c0_95] : memref<80x40xf32, #tpu.memory_space<vmem>>, vector<2x40xf32>
    %c8_96 = arith.constant 8 : index
    %c0_97 = arith.constant 0 : index
    %c0_98 = arith.constant 0 : index
    %122 = vector.load %arg3[%c8_96, %c0_97, %c0_98] : memref<10x40x128xf32, #tpu.memory_space<vmem>>, vector<1x40x128xf32>
    %123 = vector.shape_cast %122 : vector<1x40x128xf32> to vector<40x128xf32>
    %cst_99 = arith.constant dense<0.000000e+00> : vector<2x128xf32>
    %124 = tpu.matmul %121, %123, %cst_99 {dimension_numbers = #tpu.dot_dimension_numbers<[1], [0], [0], [1], [0, 0, 1, 1], [], []>} : vector<2x40xf32>, vector<40x128xf32>, vector<2x128xf32> -> vector<2x128xf32>
    %125 = arith.addf %120, %124 : vector<2x128xf32>
    %c72_100 = arith.constant 72 : index
    %c0_101 = arith.constant 0 : index
    %126 = vector.load %arg6[%c72_100, %c0_101] : memref<80x40xf32, #tpu.memory_space<vmem>>, vector<2x40xf32>
    %c9_102 = arith.constant 9 : index
    %c0_103 = arith.constant 0 : index
    %c0_104 = arith.constant 0 : index
    %127 = vector.load %arg3[%c9_102, %c0_103, %c0_104] : memref<10x40x128xf32, #tpu.memory_space<vmem>>, vector<1x40x128xf32>
    %128 = vector.shape_cast %127 : vector<1x40x128xf32> to vector<40x128xf32>
    %cst_105 = arith.constant dense<0.000000e+00> : vector<2x128xf32>
    %129 = tpu.matmul %126, %128, %cst_105 {dimension_numbers = #tpu.dot_dimension_numbers<[1], [0], [0], [1], [0, 0, 1, 1], [], []>} : vector<2x40xf32>, vector<40x128xf32>, vector<2x128xf32> -> vector<2x128xf32>
    %130 = arith.addf %125, %129 : vector<2x128xf32>
    %c0_106 = arith.constant 0 : index
    %c0_107 = arith.constant 0 : index
    %131 = vector.load %arg4[%c0_106, %c0_107] : memref<1x128xf32, #tpu.memory_space<vmem>>, vector<1x128xf32>
    %132 = vector.broadcast %131 : vector<1x128xf32> to vector<2x128xf32>
    %133 = arith.addf %130, %132 : vector<2x128xf32>
    %cst_108 = arith.constant dense<0xFF800000> : vector<2xf32>
    %134 = vector.multi_reduction <maximumf>, %133, %cst_108 [1] : vector<2x128xf32> to vector<2xf32>
    %135 = vector.shape_cast %134 : vector<2xf32> to vector<2x1xf32>
    %136 = vector.broadcast %135 : vector<2x1xf32> to vector<2x128xf32>
    %137 = arith.subf %133, %136 : vector<2x128xf32>
    %138 = math.exp %137 : vector<2x128xf32>
    %cst_109 = arith.constant dense<0.000000e+00> : vector<2xf32>
    %139 = vector.multi_reduction <add>, %138, %cst_109 [1] : vector<2x128xf32> to vector<2xf32>
    %140 = vector.shape_cast %139 : vector<2xf32> to vector<2x1xf32>
    %141 = math.log %140 : vector<2x1xf32>
    %142 = vector.broadcast %141 : vector<2x1xf32> to vector<2x128xf32>
    %143 = arith.subf %137, %142 : vector<2x128xf32>
    %c0_110 = arith.constant 0 : index
    %c0_111 = arith.constant 0 : index
    %144 = vector.load %arg5[%c0_110, %c0_111] : memref<2x128xf32, #tpu.memory_space<vmem>>, vector<2x128xf32>
    tpu.vector_store %arg5[%c0_110, %c0_111], %143 {strides = array<i32>} : memref<2x128xf32, #tpu.memory_space<vmem>>, vector<2x128xf32>,
    return
  }
  func.func @transform_0(%arg0: i32, %arg1: memref<20xi32, #tpu.memory_space<smem>>) -> (i32, i32) {
    %c0_i32 = arith.constant 0 : i32
    %c0_i32_0 = arith.constant 0 : i32
    %c0_i32_1 = arith.constant 0 : i32
    return %c0_i32, %c0_i32_0 : i32, i32
  }
  func.func @transform_1(%arg0: i32, %arg1: memref<20xi32, #tpu.memory_space<smem>>) -> (i32, i32, i32) {
    %c0_i32 = arith.constant 0 : i32
    %c0_i32_0 = arith.constant 0 : i32
    %c0_i32_1 = arith.constant 0 : i32
    %c0_i32_2 = arith.constant 0 : i32
    return %c0_i32, %c0_i32_0, %c0_i32_1 : i32, i32, i32
  }
  func.func @transform_2(%arg0: i32, %arg1: memref<20xi32, #tpu.memory_space<smem>>) -> (i32, i32) {
    %c0_i32 = arith.constant 0 : i32
    %c0_i32_0 = arith.constant 0 : i32
    %c0_i32_1 = arith.constant 0 : i32
    return %c0_i32, %c0_i32_0 : i32, i32
  }
  func.func @transform_3(%arg0: i32, %arg1: memref<20xi32, #tpu.memory_space<smem>>) -> (i32, i32) {
    %c0_i32 = arith.constant 0 : i32
    %c0_i32_0 = arith.constant 0 : i32
    %c0_i32_1 = arith.constant 0 : i32
    return %c0_i32, %c0_i32_0 : i32, i32
  }
}

</mosaic_0001>

<bundles_post_ra>
// kernel: embnet_forward.1
= control target key start
LH: loop header
LB: loop body
LE: loop exit
PB: predicated region body
PF: predicated region fallthrough
CT: control target
= control target key end

     0   :  { %s1599_s0 = inlined_call_operand.vmem [shape: s32[20], index: 0, kind: input, shape index: {}]   ;;  %s1600_s1 = inlined_call_operand.vmem [shape: f32[100,40], index: 1, kind: input, shape index: {}]   ;;  %s1601_s2 = inlined_call_operand.hbm [shape: f32[10,40,128], index: 2, kind: input, shape index: {}]   ;;  %s1602_s3 = inlined_call_operand.vmem [shape: f32[1,128], index: 3, kind: input, shape index: {}]   ;;  %s1603_s4 = inlined_call_operand.hbm [shape: f32[2,128], index: 4, kind: output, shape index: {}]  }
   0x1   :  { %s9_s17 = sshll.u32 %s1599_s0, 4  ;;  %s10_s17 = int_to_ptr.vmem [resolvable:$true] %s9_s17 }
   0x2   :  { %s1274_s18 = scalar_lea.vmem %s10_s17, 16  ;;  %p1279_p1 = scmp.lt.s32.totalorder %s10_s17, %s10_s17 }
   0x3   :  { %p1275_p0 = scmp.ne.s32.totalorder %s10_s17, %s1274_s18  ;;  %p1280_p2 = scmp.lt.s32.totalorder %s1274_s18, %s1274_s18 }
   0x5   :  { %p1281_p3 = por %p1280_p2, %p1279_p1 }
   0x7   :  { %p1282_p4 = pnand %p1281_p3, %p1275_p0 }
   0x9   :  { %1285 = shalt.err (!%p1282_p4)  }
   0xa   :  { %s1336_s19 = smov [#allocation4]  }
   0xb   :  { %12 = dma.vmem_to_smem %s10_s17, 16, %s1336_s19, [#allocation3] }
   0xc   :  { %1330 = dma.done.wait [#allocation3], 16 }
   0xd   :  { %1331 = vsyncadd [#allocation3], 4294967280 }
   0xe   :  { %14 = sfence }
   0xf   :  { %15 = vsyncpa [#allocation6], 0 }
  0x10   :  { %16 = vsyncpa [#allocation7], 0  ;;  %s1337_s20 = smov [#allocation5]   ;;  %s1286_s23 = scalar_lea.hbm %s1601_s2, 6400 }
  0x11   :  { %s24_s21 = sshll.u32 %s1337_s20, 4  ;;  %p1287_p5 = scmp.ne.s32.totalorder %s1601_s2, %s1286_s23  ;;  %s25_s21 = int_to_ptr.vmem [resolvable:$true] %s24_s21 }
  0x12   :  { %p1290_p6 = scmp.lt.u32.totalorder %s1286_s23, %s1601_s2 }
  0x14   :  { %p1292_p7 = pnand %p1290_p6, %p1287_p5 }
  0x16   :  { %1295 = shalt.err (!%p1292_p7)
}
  0x17   :  { %s1296_s28 = scalar_lea.vmem %s25_s21, 6400  ;;  %p1301_p9 = scmp.lt.s32.totalorder %s25_s21, %s25_s21 }
  0x18   :  { %p1297_p8 = scmp.ne.s32.totalorder %s25_s21, %s1296_s28  ;;  %p1302_p10 = scmp.lt.s32.totalorder %s1296_s28, %s1296_s28 }
  0x1a   :  { %p1303_p11 = por %p1302_p10, %p1301_p9 }
  0x1c   :  { %p1304_p12 = pnand %p1303_p11, %p1297_p8 }
  0x1e   :  { %1307 = shalt.err (!%p1304_p12)
}
  0x1f   :  { %s1338_s29 = smov 128   ;;  %s1339_s30 = smov 8  }
  0x20   :  { %30 = dma.hbm_to_vmem [thread:$0]  %s1601_s2, 6400, %s25_s21, [#allocation6], %s1338_s29, %s1338_s29, %s1339_s30  }
  0x21   :  { %1332 = dma.done.wait [#allocation6], 6400  }
  0x22   :  { %1333 = vsyncadd [#allocation6], 4294960896  ;;  %v1340_v0 = vmov 0.0|0.0   ;;  %s1386_s7 = sld [smem:[#allocation4 + $0x1]]  ;;  %s1388_s8 = sld [smem:[#allocation4 + $0xb]]  ;;  %vm1341_vm0 = vmmov 0  }
  0x23   :  { %1202 = vmatprep.subr.bf16.mxu0 %v1340_v0  ;;  %1208 = vmatprep.subr.bf16.mxu1 %v1340_v0  ;;  %v1342_v1 = vmov 0.0   ;;  %s1394_s2 = sld [smem:[#allocation4]]  ;;  %s1396_s9 = sld [smem:[#allocation4 + $0xa]]  ;;  %v125_v2 = vld [vmem:[#allocation5 + $0x28] sm:$0xff]  ;;  %v126_v3 = vld [vmem:[#allocation5 + $0x30] sm:$0xff]  ;;  %v118_v4 = vld [vmem:[#allocation5] sm:$0xff] }
  0x24   :  { %1082 = vmatprep.mubr.msk.f32.mxu0 %vm1341_vm0, %v1342_v1  ;;  %1095 = vmatprep.mubr.msk.f32.mxu1 %vm1341_vm0, %v1342_v1  ;;  %s1398_s10 = sld [smem:[#allocation4 + $0x2]]  ;;  %s1400_s11 = sld [smem:[#allocation4 + $0xc]]  ;;  %v1203_v5 = vpack.c.bf16 %v126_v3, %v125_v2  ;;  %v119_v6 = vld [vmem:[#allocation5 + $0x8] sm:$0xff]  ;;  %v127_v7 = vld [vmem:[#allocation5 + $0x38] sm:$0xff]  ;;  %v128_v8 = vld [vmem:[#allocation5 + $0x40] sm:$0xff]  ;;  %vm39_vm1 = vcmask 319488  }
  0x25   :  { %s1402_s12 = sld [smem:[#allocation4 + $0x3]]  ;;  %s1404_s13 = sld [smem:[#allocation4 + $0xd]]  ;;  %v1209_v9 = vpack.c.bf16 %v119_v6, %v118_v4  ;;  %v120_v10 = vld [vmem:[#allocation5 + $0x10] sm:$0xff]  ;;  %v121_v11 = vld [vmem:[#allocation5 + $0x18] sm:$0xff]  ;;  %v1206_v12 = vpack.c.bf16 %v128_v8, %v127_v7  ;;  %v129_v18 = vld [vmem:[#allocation5 + $0x48] sm:$0xff]  ;;  %vm130_vm2 = vcmask 326656  }
  0x26   :  { %s1406_s14 = sld [smem:[#allocation4 + $0x4]]  ;;  %s1424_s26 = sld [smem:[#allocation4 + $0xe]]  ;;  %1204 = vmatpush3.bf16.msra.mxu0 %v1203_v5  ;;  %v1212_v15 = vpack.c.bf16 %v121_v11, %v120_v10  ;;  %v122_v19 = vld [vmem:[#allocation5 + $0x20] sm:$0xff]  ;;  %v279_v20 = vld [vmem:[#allocation5 + $0x50] sm:$0xff]  ;;  %v280_v21 = vld [vmem:[#allocation5 + $0x58] sm:$0xff]  ;;  %vm933_vm3 = vcmask 1041408  }
  0x27   :  { %s1426_s27 = sld [smem:[#allocation4 + $0x5]]  ;;  %1210 = vmatpush3.bf16.msra.mxu1 %v1209_v9  ;;  %1205 = vmatprep.subr.bf16.mxu0 %v1340_v0  ;;  %s1435_s5 = sld [smem:[#allocation4 + $0xf]]  ;;  %v360_v23 = vld [vmem:[#allocation5 + $0x78] sm:$0xff]  ;;  %v361_v24 = vld [vmem:[#allocation5 + $0x80] sm:$0xff]  ;;  %v1215_v28 = vpack.c.bf16 %v280_v21, %v279_v20  ;;  %v282_v32 = vld [vmem:[#allocation5 + $0x68] sm:$0xff] }
  0x28   :  { %s46_s17 = scalar_lea.vmem %s1600_s1, %s1386_s7  ;;  %s50_s20 = scalar_lea.vmem %s1600_s1, %s1388_s8  ;;  %1211 = vmatprep.subr.bf16.mxu1 %v1340_v0  ;;  %v1221_v30 = vpack.c.bf16 %v361_v24, %v360_v23  ;;  %v281_v31 = vld [vmem:[#allocation5 + $0x60] sm:$0xff]  ;;  %v362_v34 = vld [vmem:[#allocation5 + $0x88] sm:$0xff]  ;;  %v363_v35 = vld [vmem:[#allocation5 + $0x90] sm:$0xff] }
  0x29   :  { %s37_s0 = scalar_lea.vmem %s1600_s1, %s1394_s2  ;;  %s42_s25 = scalar_lea.vmem %s1600_s1, %s1396_s9  ;;  %v47_v13 = vld [vmem:[%s46_s17] sm:$0x1]  ;;  %v1218_v38 = vpack.c.bf16 %v282_v32, %v281_v31  ;;  %v1224_v40 = vpack.c.bf16 %v363_v35, %v362_v34  ;;  %v441_v43 = vld [vmem:[#allocation5 + $0xa0] sm:$0xff]  ;;  %v442_v44 = vld [vmem:[#allocation5 + $0xa8] sm:$0xff] }
  0x2a   :  { %v51_v14 = vld [vmem:[%s50_s20] sm:$0x1]  ;;  %48 = vst.msk [vmem:[#allocation2 + $0x8] sm:$0x1] %vm39_vm1, %v47_v13  ;;  %s54_s30 = scalar_lea.vmem %s1600_s1, %s1398_s10  ;;  %s58_s8 = scalar_lea.vmem %s1600_s1, %s1400_s11  ;;  %1207 = vmatpush3.bf16.msra.mxu0 %v1206_v12  ;;  %v364_v47 = vld [vmem:[#allocation5 + $0x98] sm:$0xff]  ;;  %v522_v48 = vld [vmem:[#allocation5 + $0xc8] sm:$0xff]  ;;  %v1227_v53 = vpack.c.bf16 %v442_v44, %v441_v43 }
  0x2b   :  { %52 = vst.msk [vmem:[#allocation2 + $0x9] sm:$0x1] %vm39_vm1, %v51_v14  ;;  %v38_v16 = vld [vmem:[%s37_s0] sm:$0x1]  ;;  %s62_s15 = scalar_lea.vmem %s1600_s1, %s1402_s12  ;;  %s66_s10 = scalar_lea.vmem %s1600_s1, %s1404_s13  ;;  %1213 = vmatpush3.bf16.msra.mxu1 %v1212_v15  ;;  %1080 = vmatprep.subr.mxu0 %v1342_v1  ;;  %v444_v57 = vld [vmem:[#allocation5 + $0xb8] sm:$0xff]  ;;  %v525_v59 = vld [vmem:[#allocation5 + $0xe0] sm:$0xff] }
  0x2c   :  { %v43_v17 = vld [vmem:[%s42_s25] sm:$0x1]  ;;  %40 = vst.msk [vmem:[#allocation2] sm:$0x1] %vm39_vm1, %v38_v16  ;;  %s1452_s18 = sld [smem:[#allocation4 + $0x6]]  ;;  %s1454_s19 = sld [smem:[#allocation4 + $0x10]]  ;;  %1093 = vmatprep.subr.mxu1 %v1342_v1 }
  0x2d   :  { %44 = vst.msk [vmem:[#allocation2 + $0x1] sm:$0x1] %vm39_vm1, %v43_v17  ;;  %v55_v22 = vld [vmem:[%s54_s30] sm:$0x1]  ;;  %s70_s13 = scalar_lea.vmem %s1600_s1, %s1406_s14  ;;  %s1464_s20 = sld [smem:[#allocation4 + $0x7]]  ;;  %v524_v58 = vld [vmem:[#allocation5 + $0xd8] sm:$0xff] }
  0x2e   :  { %56 = vst.msk [vmem:[#allocation2 + $0x10] sm:$0x1] %vm39_vm1, %v55_v22  ;;  %v59_v25 = vld [vmem:[%s58_s8] sm:$0x1]  ;;  %s74_s0 = scalar_lea.vmem %s1600_s1, %s1424_s26  ;;  %s1472_s23 = sld [smem:[#allocation4 + $0x11]]  ;;  %1081 = vmatpush3.msra.mxu0 %v129_v18  ;;  %v1236_v3 = vpack.c.bf16 %v525_v59, %v524_v58  ;;  %v604_v5 = vld [vmem:[#allocation5 + $0xf8] sm:$0xff] }
  0x2f   :  { %60 = vst.msk [vmem:[#allocation2 + $0x11] sm:$0x1] %vm39_vm1, %v59_v25  ;;  %v63_v26 = vld [vmem:[%s62_s15] sm:$0x1]  ;;  %s78_s25 = scalar_lea.vmem %s1600_s1, %s1426_s27  ;;  %1094 = vmatpush3.msra.mxu1 %v122_v19  ;;  %s82_s29 = scalar_lea.vmem %s1600_s1, %s1435_s5  ;;  %1214 = vmatprep.subr.bf16.mxu0 %v1340_v0  ;;  %v445_v6 = vld [vmem:[#allocation5 + $0xc0] sm:$0xff]  ;;  %v684_v7 = vld [vmem:[#allocation5 + $0x118] sm:$0xff] }
  0x30   :  { %v67_v27 = vld [vmem:[%s66_s10] sm:$0x1]  ;;  %64 = vst.msk [vmem:[#allocation2 + $0x18] sm:$0x1] %vm39_vm1, %v63_v26  ;;  %s1483_s30 = sld [smem:[#allocation4 + $0x8]]  ;;  %s1487_s27 = sld [smem:[#allocation4 + $0x12]]  ;;  %1220 = vmatprep.subr.bf16.mxu1 %v1340_v0 }
  0x31   :  { %68 = vst.msk [vmem:[#allocation2 + $0x19] sm:$0x1] %vm39_vm1, %v67_v27  ;;  %v71_v36 = vld [vmem:[%s70_s13] sm:$0x1]  ;;  %s1496_s8 = sld [smem:[#allocation4 + $0x9]]  ;;  %s1504_s16 = sld [smem:[#allocation4 + $0x13]] }
  0x32   :  { %v123_v29 = vld [vmem:[#allocation2 + $0x8] sm:$0x3]  ;;  %v75_v37 = vld [vmem:[%s74_s0] sm:$0x1]  ;;  %72 = vst.msk [vmem:[#allocation2 + $0x20] sm:$0x1] %vm39_vm1, %v71_v36  ;;  %s86_s7 = scalar_lea.vmem %s1600_s1, %s1452_s18  ;;  %s90_s15 = scalar_lea.vmem %s1600_s1, %s1454_s19 }
  0x33   :  { %1083 = vmatmul.mubr.msk.f32.vlgmr.msra.gmra.mrb[0].mxu0 %vm130_vm2, %v123_v29  ;;  %76 = vst.msk [vmem:[#allocation2 + $0x21] sm:$0x1] %vm39_vm1, %v75_v37  ;;  %v79_v39 = vld [vmem:[%s78_s25] sm:$0x1]  ;;  %s94_s18 = scalar_lea.vmem %s1600_s1, %s1464_s20  ;;  %v685_v8 = vld [vmem:[#allocation5 + $0x120] sm:$0xff]  ;;  %v526_v10 = vld [vmem:[#allocation5 + $0xe8] sm:$0xff] }
  0x34   :  { %v117_v33 = vld [vmem:[#allocation2] sm:$0x3]  ;;  %1216 = vmatpush3.bf16.msra.mxu0 %v1215_v28  ;;  %80 = vst.msk [vmem:[#allocation2 + $0x28] sm:$0x1] %vm39_vm1, %v79_v39  ;;  %1108 = vmatprep.mubr.msk.f32.mxu0 %vm1341_vm0, %v1342_v1  ;;  %s98_s12 = scalar_lea.vmem %s1600_s1, %s1472_s23  ;;  %v1245_v13 = vpack.c.bf16 %v685_v8, %v684_v7  ;;  %v605_v14 = vld [vmem:[#allocation5 + $0x100] sm:$0xff]  ;;  %v606_v15 = vld [vmem:[#allocation5 + $0x108] sm:$0xff] }
  0x35   :  { %1096 = vmatmul.mubr.msk.f32.vlgmr.msra.gmra.mrb[0].mxu1 %vm130_vm2, %v117_v33  ;;  %1217 = vmatprep.subr.bf16.mxu0 %v1340_v0  ;;  %v83_v41 = vld [vmem:[%s82_s29] sm:$0x1]  ;;  %v686_v16 = vld [vmem:[#allocation5 + $0x128] sm:$0xff]  ;;  %v1242_v18 = vpack.c.bf16 %v606_v15, %v605_v14  ;;  %v765_v20 = vld [vmem:[#allocation5 + $0x140] sm:$0xff] }
  0x36   :  { %1222 = vmatpush3.bf16.msra.mxu1 %v1221_v30  ;;  %84 = vst.msk [vmem:[#allocation2 + $0x29] sm:$0x1] %vm39_vm1, %v83_v41  ;;  %v283_v42 = vld [vmem:[#allocation5 + $0x70] sm:$0xff]  ;;  %1121 = vmatprep.mubr.msk.f32.mxu1 %vm1341_vm0, %v1342_v1  ;;  %v277_v50 = vld [vmem:[#allocation2 + $0x10] sm:$0x3]  ;;  %s102_s21 = scalar_lea.vmem %s1600_s1, %s1483_s30  ;;  %s106_s23 = scalar_lea.vmem %s1600_s1, %s1487_s27  ;;  %v766_v21 = vld [vmem:[#allocation5 + $0x148] sm:$0xff] }
  0x37   :  { %1223 = vmatprep.subr.bf16.mxu1 %v1340_v0  ;;  %v87_v45 = vld [vmem:[%s86_s7] sm:$0x1]  ;;  %s110_s25 = scalar_lea.vmem %s1600_s1, %s1496_s8  ;;  %s114_s29 = scalar_lea.vmem %s1600_s1, %s1504_s16  ;;  %v846_v23 = vld [vmem:[#allocation5 + $0x168] sm:$0xff]  ;;  %v688_v26 = vld [vmem:[#allocation5 + $0x138] sm:$0xff]  ;;  %v1251_v27 = vpack.c.bf16 %v766_v21, %v765_v20 }
  0x38   :  { %1219 = vmatpush3.bf16.msra.mxu0 %v1218_v38  ;;  %v91_v46 = vld [vmem:[%s90_s15] sm:$0x1]  ;;  %88 = vst.msk [vmem:[#allocation2 + $0x30] sm:$0x1] %vm39_vm1, %v87_v45  ;;  %v358_v54 = vld [vmem:[#allocation2 + $0x18] sm:$0x3] }
  0x39   :  { %1106 = vmatprep.subr.mxu0 %v1342_v1  ;;  %v523_v49 = vld [vmem:[#allocation5 + $0xd0] sm:$0xff]  ;;  %92 = vst.msk [vmem:[#allocation2 + $0x31] sm:$0x1] %vm39_vm1, %v91_v46  ;;  %v768_v31 = vld [vmem:[#allocation5 + $0x158] sm:$0xff]  ;;  %v849_v33 = vld [vmem:[#allocation5 + $0x180] sm:$0xff]  ;;  %s1343_s27 = smov [#allocation8]  }
  0x3a   :  { %1225 = vmatpush3.bf16.msra.mxu1 %v1224_v40  ;;  %v95_v51 = vld [vmem:[%s94_s18] sm:$0x1]  ;;  %v1233_v55 = vpack.c.bf16 %v523_v49, %v522_v48  ;;  %v848_v32 = vld [vmem:[#allocation5 + $0x178] sm:$0xff]  ;;  %v769_v36 = vld [vmem:[#allocation5 + $0x160] sm:$0xff]  ;;  %s953_s5 = sshll.u32 %s1343_s27, 4  ;;  %s954_s5 = int_to_ptr.vmem [resolvable:$true] %s953_s5 }
  0x3b   :  { %1119 = vmatprep.subr.mxu1 %v1342_v1  ;;  %v99_v52 = vld [vmem:[%s98_s12] sm:$0x1]  ;;  %96 = vst.msk [vmem:[#allocation2 + $0x38] sm:$0x1] %vm39_vm1, %v95_v51  ;;  %v1260_v35 = vpack.c.bf16 %v849_v33, %v848_v32  ;;  %v850_v38 = vld [vmem:[#allocation5 + $0x188] sm:$0xff]  ;;  %p1313_p0 = scmp.lt.s32.totalorder %s954_s5, %s954_s5 }
  0x3c   :  { %100 = vst.msk [vmem:[#allocation2 + $0x39] sm:$0x1] %vm39_vm1, %v99_v52  ;;  %1107 = vmatpush3.msra.mxu0 %v283_v42  ;;  %v443_v56 = vld [vmem:[#allocation5 + $0xb0] sm:$0xff] }
  0x3d   :  { %1109 = vmatmul.mubr.msk.f32.vlgmr.msra.gmra.mrb[2].mxu0 %vm130_vm2, %v277_v50  ;;  %v103_v60 = vld [vmem:[%s102_s21] sm:$0x1]  ;;  %1226 = vmatprep.subr.bf16.mxu0 %v1340_v0  ;;  %v1230_v63 = vpack.c.bf16 %v444_v57, %v443_v56  ;;  %v520_v12 = vld [vmem:[#allocation2 + $0x28] sm:$0x3] }
  0x3e   :  { %1120 = vmatpush3.msra.mxu1 %v364_v47  ;;  %104 = vst.msk [vmem:[#allocation2 + $0x40] sm:$0x1] %vm39_vm1, %v103_v60  ;;  %v107_v61 = vld [vmem:[%s106_s23] sm:$0x1]  ;;  %1228 = vmatpush3.bf16.msra.mxu0 %v1227_v53 }
  0x3f   :  { %1232 = vmatprep.subr.bf16.mxu1 %v1340_v0  ;;  %v111_v62 = vld [vmem:[%s110_s25] sm:$0x1]  ;;  %1122 = vmatmul.mubr.msk.f32.vlgmr.msra.gmra.mrb[2].mxu1 %vm130_vm2, %v358_v54  ;;  %108 = vst.msk [vmem:[#allocation2 + $0x41] sm:$0x1] %vm39_vm1, %v107_v61 }
  0x40   :  { %112 = vst.msk [vmem:[#allocation2 + $0x48] sm:$0x1] %vm39_vm1, %v111_v62  ;;  %v115_v2 = vld [vmem:[%s114_s29] sm:$0x1]  ;;  %1234 = vmatpush3.bf16.msra.mxu1 %v1233_v55  ;;  %1229 = vmatprep.subr.bf16.mxu0 %v1340_v0  ;;  %v601_v25 = vld [vmem:[#allocation2 + $0x30] sm:$0x3] }
  0x41   :  { %116 = vst.msk [vmem:[#allocation2 + $0x49] sm:$0x1] %vm39_vm1, %v115_v2  ;;  %1235 = vmatprep.subr.bf16.mxu1 %v1340_v0  ;;  %1134 = vmatprep.mubr.msk.f32.mxu0 %vm1341_vm0, %v1342_v1  ;;  %v603_v4 = vld [vmem:[#allocation5 + $0xf0] sm:$0xff] }
  0x42   :  { %1147 = vmatprep.mubr.msk.f32.mxu1 %vm1341_vm0, %v1342_v1  ;;  %1231 = vmatpush3.bf16.msra.mxu0 %v1230_v63  ;;  %v439_v9 = vld [vmem:[#allocation2 + $0x20] sm:$0x3]  ;;  %v1239_v11 = vpack.c.bf16 %v604_v5, %v603_v4 }
  0x43   :  { %1132 = vmatprep.subr.mxu0 %v1342_v1  ;;  %v687_v17 = vld [vmem:[#allocation5 + $0x130] sm:$0xff]  ;;  %v682_v28 = vld [vmem:[#allocation2 + $0x38] sm:$0x3] }
  0x44   :  { %1237 = vmatpush3.bf16.msra.mxu1 %v1236_v3  ;;  %v1248_v19 = vpack.c.bf16 %v687_v17, %v686_v16  ;;  %v607_v22 = vld [vmem:[#allocation5 + $0x110] sm:$0xff] }
  0x45   :  { %1145 = vmatprep.subr.mxu1 %v1342_v1  ;;  %v847_v24 = vld [vmem:[#allocation5 + $0x170] sm:$0xff] }
  0x46   :  { %1133 = vmatpush3.msra.mxu0 %v445_v6  ;;  %v1257_v29 = vpack.c.bf16 %v847_v24, %v846_v23  ;;  %v767_v30 = vld [vmem:[#allocation5 + $0x150] sm:$0xff] }
  0x47   :  { %1135 = vmatmul.mubr.msk.f32.vlgmr.msra.gmra.mrb[4].mxu0 %vm130_vm2, %v439_v9  ;;  %1238 = vmatprep.subr.bf16.mxu0 %v1340_v0  ;;  %v1254_v34 = vpack.c.bf16 %v768_v31, %v767_v30  ;;  %v763_v37 = vld [vmem:[#allocation2 + $0x40] sm:$0x3] }
  0x48   :  { %1146 = vmatpush3.msra.mxu1 %v526_v10  ;;  %1240 = vmatpush3.bf16.msra.mxu0 %v1239_v11  ;;  %v844_v39 = vld [vmem:[#allocation2 + $0x48] sm:$0x3]  ;;  %v1011_v4 = vld [vmem:[%s1602_s3] ss:$0 sm:$0xff]  ;;  %s1308_s3 = scalar_lea.vmem %s954_s5, 32 }
  0x49   :  { %1244 = vmatprep.subr.bf16.mxu1 %v1340_v0  ;;  %1148 = vmatmul.mubr.msk.f32.vlgmr.msra.gmra.mrb[4].mxu1 %vm130_vm2, %v520_v12  ;;  %p1309_p13 = scmp.ne.s32.totalorder %s954_s5, %s1308_s3  ;;  %p1314_p1 = scmp.lt.s32.totalorder %s1308_s3, %s1308_s3 }
  0x4a   :  { %1246 = vmatpush3.bf16.msra.mxu1 %v1245_v13  ;;  %1241 = vmatprep.subr.bf16.mxu0 %v1340_v0 }
  0x4b   :  { %1247 = vmatprep.subr.bf16.mxu1 %v1340_v0  ;;  %1160 = vmatprep.mubr.msk.f32.mxu0 %vm1341_vm0, %v1342_v1  ;;  %p1315_p2 = por %p1314_p1, %p1313_p0 }
  0x4c   :  { %1173 = vmatprep.mubr.msk.f32.mxu1 %vm1341_vm0, %v1342_v1  ;;  %1243 = vmatpush3.bf16.msra.mxu0 %v1242_v18 }
  0x4d   :  { %1158 = vmatprep.subr.mxu0 %v1342_v1  ;;  %p1316_p3 = pnand %p1315_p2, %p1309_p13 }
  0x4e   :  { %1249 = vmatpush3.bf16.msra.mxu1 %v1248_v19 }
  0x4f   :  { %1171 = vmatprep.subr.mxu1 %v1342_v1 }
  0x50   :  { %1159 = vmatpush3.msra.mxu0 %v607_v22 }
  0x51   :  { %1161 = vmatmul.mubr.msk.f32.vlgmr.msra.gmra.mrb[6].mxu0 %vm130_vm2, %v601_v25  ;;  %1250 = vmatprep.subr.bf16.mxu0 %v1340_v0 }
  0x52   :  { %1172 = vmatpush3.msra.mxu1 %v688_v26  ;;  %1252 = vmatpush3.bf16.msra.mxu0 %v1251_v27 }
  0x53   :  { %1256 = vmatprep.subr.bf16.mxu1 %v1340_v0  ;;  %1174 = vmatmul.mubr.msk.f32.vlgmr.msra.gmra.mrb[6].mxu1 %vm130_vm2, %v682_v28 }
  0x54   :  { %1258 = vmatpush3.bf16.msra.mxu1 %v1257_v29  ;;  %1253 = vmatprep.subr.bf16.mxu0 %v1340_v0 }
  0x55   :  { %1259 = vmatprep.subr.bf16.mxu1 %v1340_v0  ;;  %1186 = vmatprep.mubr.msk.f32.mxu0 %vm1341_vm0, %v1342_v1 }
  0x56   :  { %1199 = vmatprep.mubr.msk.f32.mxu1 %vm1341_vm0, %v1342_v1  ;;  %1255 = vmatpush3.bf16.msra.mxu0 %v1254_v34 }
  0x57   :  { %1184 = vmatprep.subr.mxu0 %v1342_v1 }
  0x58   :  { %1261 = vmatpush3.bf16.msra.mxu1 %v1260_v35 }
  0x59   :  { %1197 = vmatprep.subr.mxu1 %v1342_v1 }
  0x5a   :  { %1185 = vmatpush3.msra.mxu0 %v769_v36 }
  0x5b   :  { %1187 = vmatmul.mubr.msk.f32.vlgmr.msra.gmra.mrb[8].mxu0 %vm130_vm2, %v763_v37 }
  0x5c   :  { %1198 = vmatpush3.msra.mxu1 %v850_v38 }
  0x5d   :  { %1200 = vmatmul.mubr.msk.f32.vlgmr.msra.gmra.mrb[8].mxu1 %vm130_vm2, %v844_v39 }
 0x106   :  { %v200_v0 = vpop.f32.mrb[0].mxu0 }
 0x107   :  { %v1084_v40 = vpop.f32.mrb[1].mxu0 }
 0x108   :  { %v273_v41 = vpop.f32.mrb[0].mxu1 }
 0x109   :  { %v274_v42 = vadd.f32 %v273_v41, %v200_v0  ;;  %v1097_v43 = vpop.f32.mrb[1].mxu1 }
 0x110   :  { %v353_v44 = vpop.f32.mrb[2].mxu0 }
 0x111   :  { %v357_v45 = vadd.f32 %v353_v44, %v274_v42  ;;  %v1110_v46 = vpop.f32.mrb[3].mxu0 }
 0x112   :  { %v434_v47 = vpop.f32.mrb[2].mxu1 }
 0x113   :  { %v438_v48 = vadd.f32 %v434_v47, %v357_v45  ;;  %v1123_v1 = vpop.f32.mrb[3].mxu1 }
 0x11a   :  { %v515_v49 = vpop.f32.mrb[4].mxu0 }
 0x11b   :  { %v519_v50 = vadd.f32 %v515_v49, %v438_v48  ;;  %v1136_v51 = vpop.f32.mrb[5].mxu0 }
 0x11c   :  { %v596_v52 = vpop.f32.mrb[4].mxu1 }
 0x11d   :  { %v600_v53 = vadd.f32 %v596_v52, %v519_v50  ;;  %v1149_v54 = vpop.f32.mrb[5].mxu1 }
 0x124   :  { %v677_v55 = vpop.f32.mrb[6].mxu0 }
 0x125   :  { %v681_v56 = vadd.f32 %v677_v55, %v600_v53  ;;  %v1162_v57 = vpop.f32.mrb[7].mxu0 }
 0x126   :  { %v758_v58 = vpop.f32.mrb[6].mxu1 }
 0x127   :  { %v762_v59 = vadd.f32 %v758_v58, %v681_v56  ;;  %v1175_v60 = vpop.f32.mrb[7].mxu1 }
 0x12e   :  { %v839_v61 = vpop.f32.mrb[8].mxu0 }
 0x12f   :  { %v843_v62 = vadd.f32 %v839_v61, %v762_v59  ;;  %v1188_v63 = vpop.f32.mrb[9].mxu0 }
 0x130   :  { %v920_v2 = vpop.f32.mrb[8].mxu1 }
 0x131   :  { %v1201_v3 = vpop.f32.mrb[9].mxu1  ;;  %v924_v5 = vadd.f32 %v920_v2, %v843_v62 }
 0x133   :  { %v932_v6 = vadd.f32 %v1011_v4, %v924_v5 }
 0x135   :  { %v934_v7 = vsel %vm933_vm3, %v932_v6, -inf }
 0x136   :  { %935 = vmax.xlane.f32.xlu0 %v934_v7 }
 0x1c3   :  { %v936_v8 = vpop.xlane.xlu0 %935 }
 0x1c4   :  { %v937_v9 = vsub.f32 %v932_v6, %v936_v8 }
 0x1c6   :  { %v938_v10 = vmul.f32 1.442695, %v937_v9 }
 0x1c8   :  { %1270 = vpow2.f32 %v938_v10 }
 0x1d2   :  { %v1271_v11 = vpop.eup %1270 }
 0x1d3   :  { %v940_v12 = vsel %vm933_vm3, %v1271_v11, 0.0 }
 0x1d4   :  { %941 = vadd.xlane.f32.xlu0 %v940_v12 }
 0x261   :  { %v942_v13 = vpop.xlane.xlu0 %941 }
 0x262   :  { %1272 = vlog2.f32 %v942_v13 }
 0x26c   :  { %v1273_v14 = vpop.eup %1272 }
 0x26d   :  { %v944_v15 = vmul.f32 0.6931472, %v1273_v14 }
 0x26f   :  { %v945_v16 = vsub.f32 %v937_v9, %v944_v15 }
 0x271   :  { %946 = vst [vmem:[#allocation8] sm:$0x3] %v945_v16 }
 0x272   :  { %1319 = shalt.err (!%p1316_p3)
}
 0x273   :  { %s1320_s8 = scalar_lea.hbm %s1603_s4, 32 }
 0x274   :  { %p1321_p4 = scmp.ne.s32.totalorder %s1603_s4, %s1320_s8  ;;  %p1324_p5 = scmp.lt.u32.totalorder %s1320_s8, %s1603_s4 }
 0x276   :  { %p1326_p6 = pnand %p1324_p5, %p1321_p4 }
 0x278   :  { %1329 = shalt.err (!%p1326_p6)
}
 0x279   :  { %956 = dma.vmem_to_hbm [thread:$0]  %s954_s5, 32, %s1603_s4, [#allocation7]  }
 0x27a   :  { %1334 = dma.done.wait [#allocation7], 32  }
 0x27b   :  { %1335 = vsyncadd [#allocation7], 4294967264 }
 0x27c   :  { %960 = vsyncpa [#allocation6], 1 }
 0x27d   :  { %961 = vsyncpa [#allocation7], 1 }

</bundles_post_ra>
